<compile_context>
chip_gen: v7x
topology: tpu7x:2x2x1
jax: 0.10.0
libtpu: 0.0.40
codegen_flags: <defaults>
</compile_context>

<pallas_src>
import functools

import jax
import jax.numpy as jnp
from jax import lax
from jax.experimental import pallas as pl
from jax.experimental.pallas import tpu as pltpu


def _round_up(x, m):
    return (x + m - 1) // m * m


def _rnn_chunk_kernel(
    z_ref,         # (T_BLK, B, H)  hoisted input projection for this time chunk
    h0_ref,        # (B, H)         initial hidden state
    w_hh_ref,      # (H, H)         recurrent weight (pre-transposed: h @ W_hh)
    alpha_ref,     # (1, H)         leak coefficient
    om_alpha_ref,  # (1, H)         1 - alpha (hoisted)
    hlist_ref,     # (T_BLK, B, H)  output: hidden_list for this chunk
    h_scratch,     # (B, H) f32     hidden state carried across grid steps
):
    @pl.when(pl.program_id(0) == 0)
    def _():
        h_scratch[...] = h0_ref[...]

    w_hh = w_hh_ref[...]
    alpha = alpha_ref[...]
    one_minus_alpha = om_alpha_ref[...]
    t_blk = z_ref.shape[0]

    def step(i, h):
        # Only one matmul on the serial path: h @ W_hh  (+ precomputed z[t]).
        pre = jnp.dot(h, w_hh, preferred_element_type=jnp.float32) + z_ref[i]
        h_cand = jnp.maximum(pre, 0.0)
        h_new = one_minus_alpha * h + alpha * h_cand
        hlist_ref[i] = h_new.astype(hlist_ref.dtype)
        return h_new

    h_final = lax.fori_loop(0, t_blk, step, h_scratch[...], unroll=True)
    h_scratch[...] = h_final


@functools.partial(jax.jit, static_argnames=("t_block",))
def recurrent_net_forward(input_signal, hidden, params, *, t_block=8):
    """input_signal: (B, T, n_in), hidden: (B, H).
    Returns (hidden_list (B,T,H), output_list (B,T,n_out), final hidden (B,H))."""
    B, T, n_in = input_signal.shape
    H = hidden.shape[-1]
    n_out = params["w_out"].shape[-1]
    out_dtype = input_signal.dtype

    # ---- hoisted input projection: all timesteps at once (M = T*B) ----
    x_tm = jnp.transpose(input_signal, (1, 0, 2)).reshape(T * B, n_in)
    xin = x_tm.astype(jnp.float32) @ params["w_in"] + params["b_in"]
    z = xin @ params["w_ih"] + (params["b_ih"] + params["b_hh"])
    z_tm = z.reshape(T, B, H).astype(jnp.float32)

    # ---- pad to (8, 128)-aligned shapes; zero padding is exact here ----
    t_block = max(1, min(int(t_block), T))
    B_p = _round_up(B, 8)
    H_p = _round_up(H, 128)
    T_p = _round_up(T, t_block)

    z_p = jnp.pad(z_tm, ((0, T_p - T), (0, B_p - B), (0, H_p - H)))
    h0_p = jnp.pad(hidden.astype(jnp.float32), ((0, B_p - B), (0, H_p - H)))
    w_hh_p = jnp.pad(params["w_hh"].astype(jnp.float32),
                     ((0, H_p - H), (0, H_p - H)))
    alpha_p = jnp.pad(params["alpha"].astype(jnp.float32),
                      ((0, 0), (0, H_p - H)))
    om_alpha_p = 1.0 - alpha_p

    grid = (T_p // t_block,)
    const = lambda shape: pl.BlockSpec(shape, lambda t: (0,) * len(shape))

    grid_spec = pltpu.PrefetchScalarGridSpec(
        num_scalar_prefetch=0,
        grid=grid,
        in_specs=[
            pl.BlockSpec((t_block, B_p, H_p), lambda t: (t, 0, 0)),  # z chunk
            const((B_p, H_p)),   # h0
            const((H_p, H_p)),   # w_hh
            const((1, H_p)),     # alpha
            const((1, H_p)),     # 1 - alpha
        ],
        out_specs=pl.BlockSpec((t_block, B_p, H_p), lambda t: (t, 0, 0)),
        scratch_shapes=[pltpu.VMEM((B_p, H_p), jnp.float32)],
    )

    hlist_tm_p = pl.pallas_call(
        _rnn_chunk_kernel,
        grid_spec=grid_spec,
        out_shape=jax.ShapeDtypeStruct((T_p, B_p, H_p), jnp.float32),
        compiler_params=pltpu.CompilerParams(
            dimension_semantics=("arbitrary",),  # time axis is sequential
        ),
    )(z_p, h0_p, w_hh_p, alpha_p, om_alpha_p)

    # ---- un-pad, single transpose, hoisted output projection ----
    hlist_tm = hlist_tm_p[:T, :B, :H]                      # (T, B, H)
    hidden_list = jnp.transpose(hlist_tm, (1, 0, 2))       # (B, T, H)
    output_list = (hidden_list.reshape(B * T, H) @ params["w_out"]
                   + params["b_out"]).reshape(B, T, n_out)
    h_final = hidden_list[:, -1, :]                        # == hidden after last step

    return (hidden_list.astype(out_dtype),
            output_list.astype(out_dtype),
            h_final.astype(out_dtype))


def make_params(key, n_in, n_hid, n_out):
    """Deterministic synthetic parameter init (shapes match the PyTorch module)."""
    ks = jax.random.split(key, 8)
    u = lambda k, shape, s: jax.random.uniform(k, shape, jnp.float32, -s, s)
    # Linear weights stored pre-transposed: (in_features, out_features).
    params = {
        "w_in": u(ks[0], (n_in, n_hid), 1.0 / jnp.sqrt(n_in)),
        "b_in": u(ks[1], (1, n_hid), 1.0 / jnp.sqrt(n_in)),
        "w_ih": u(ks[2], (n_hid, n_hid), 1.0 / jnp.sqrt(n_hid)),
        "b_ih": u(ks[3], (1, n_hid), 1.0 / jnp.sqrt(n_hid)),
        "w_hh": u(ks[4], (n_hid, n_hid), 1.0 / jnp.sqrt(n_hid)),
        "b_hh": u(ks[5], (1, n_hid), 1.0 / jnp.sqrt(n_hid)),
        "w_out": u(ks[6], (n_hid, n_out), 1.0 / jnp.sqrt(n_hid)),
        "b_out": u(ks[7], (1, n_out), 1.0 / jnp.sqrt(n_hid)),
        # alpha = nn.Linear(1, n_hid, bias=False) applied to [1.0] -> its weight column.
        # (default module uses [0.1]*50 + [0.4]*450 for n_hid=500; scaled pattern here)
        "alpha": jnp.concatenate(
            [jnp.full((n_hid // 4,), 0.1), jnp.full((n_hid - n_hid // 4,), 0.4)]
        ).reshape(1, n_hid).astype(jnp.float32),
    }
    return params


def reference_forward(input_signal, hidden, params):
    """Pure-JAX reference mirroring the PyTorch loop (for correctness check)."""
    x_tm = jnp.transpose(input_signal, (1, 0, 2))
    alpha = params["alpha"]

    def step(h, x_t):
        xin = x_t @ params["w_in"] + params["b_in"]
        pre = xin @ params["w_ih"] + params["b_ih"] + h @ params["w_hh"] + params["b_hh"]
        h_cand = jnp.maximum(pre, 0.0)
        h = (1.0 - alpha) * h + alpha * h_cand
        out = h @ params["w_out"] + params["b_out"]
        return h, (h, out)

    h_final, (hs, outs) = jax.lax.scan(step, hidden, x_tm)
    return jnp.transpose(hs, (1, 0, 2)), jnp.transpose(outs, (1, 0, 2)), h_final


if __name__ == "__main__":
    B, T, n_in, n_hid, n_out = 2, 8, 4, 32, 3

    key = jax.random.PRNGKey(0)
    k_p, k_x, k_h = jax.random.split(key, 3)

    params = make_params(k_p, n_in, n_hid, n_out)
    input_signal = jax.random.normal(k_x, (B, T, n_in), jnp.float32)
    hidden0 = jax.random.normal(k_h, (B, n_hid), jnp.float32)

    # t_block=4 -> grid of 2 time chunks: exercises the carried hidden state.
    hidden_list, output_list, h_final = recurrent_net_forward(
        input_signal, hidden0, params, t_block=4
    )
    jax.block_until_ready((hidden_list, output_list, h_final))

    # sanity check against pure-JAX reference
    ref_hl, ref_ol, ref_hf = reference_forward(input_signal, hidden0, params)
    assert jnp.allclose(hidden_list, ref_hl, atol=1e-5, rtol=1e-5)
    assert jnp.allclose(output_list, ref_ol, atol=1e-5, rtol=1e-5)
    assert jnp.allclose(h_final, ref_hf, atol=1e-5, rtol=1e-5)
    assert hidden_list.shape == (B, T, n_hid)
    assert output_list.shape == (B, T, n_out)
    assert h_final.shape == (B, n_hid)

    print("KERNEL_OK")
</pallas_src>

<mosaic_0001>
module attributes {stable_mosaic.version = 11 : i64} {
  func.func @_rnn_chunk_kernel(%arg0: i32, %arg1: memref<4x8x128xf32, #tpu.memory_space<vmem>>, %arg2: memref<8x128xf32, #tpu.memory_space<vmem>>, %arg3: memref<128x128xf32, #tpu.memory_space<vmem>>, %arg4: memref<1x128xf32, #tpu.memory_space<vmem>>, %arg5: memref<1x128xf32, #tpu.memory_space<vmem>>, %arg6: memref<4x8x128xf32, #tpu.memory_space<vmem>>, %arg7: memref<8x128xf32, #tpu.memory_space<vmem>>) attributes {dimension_semantics = [#tpu.dimension_semantics<arbitrary>], iteration_bounds = array<i64: 2>, scalar_prefetch = 0 : i64, scratch_operands = 1 : i64, tpu.core_type = #tpu.core_type<tc>, window_params = [{transform_indices = @transform_0, window_bounds = array<i64: 4, 8, 128>}, {pipeline_mode = #tpu.pipeline_mode<synchronous>, transform_indices = @transform_1, window_bounds = array<i64: 8, 128>}, {pipeline_mode = #tpu.pipeline_mode<synchronous>, transform_indices = @transform_2, window_bounds = array<i64: 128, 128>}, {pipeline_mode = #tpu.pipeline_mode<synchronous>, transform_indices = @transform_3, window_bounds = array<i64: 1, 128>}, {pipeline_mode = #tpu.pipeline_mode<synchronous>, transform_indices = @transform_4, window_bounds = array<i64: 1, 128>}, {transform_indices = @transform_5, window_bounds = array<i64: 4, 8, 128>}]} {
    %c0_i32 = arith.constant 0 : i32
    %0 = arith.cmpi eq, %arg0, %c0_i32 : i32
    %1 = arith.extui %0 : i1 to i32
    %c0_i32_0 = arith.constant 0 : i32
    %2 = arith.cmpi ne, %1, %c0_i32_0 : i32
    scf.if %2 {
      %c0_34 = arith.constant 0 : index
      %c0_35 = arith.constant 0 : index
      %72 = vector.load %arg2[%c0_34, %c0_35] : memref<8x128xf32, #tpu.memory_space<vmem>>, vector<8x128xf32>
      %c0_36 = arith.constant 0 : index
      %c0_37 = arith.constant 0 : index
      %73 = vector.load %arg7[%c0_36, %c0_37] : memref<8x128xf32, #tpu.memory_space<vmem>>, vector<8x128xf32>
      tpu.vector_store %arg7[%c0_36, %c0_37], %72 {strides = array<i32>} : memref<8x128xf32, #tpu.memory_space<vmem>>, vector<8x128xf32>,
    } else {
    }
    %c0 = arith.constant 0 : index
    %c0_1 = arith.constant 0 : index
    %3 = vector.load %arg3[%c0, %c0_1] : memref<128x128xf32, #tpu.memory_space<vmem>>, vector<128x128xf32>
    %c0_2 = arith.constant 0 : index
    %c0_3 = arith.constant 0 : index
    %4 = vector.load %arg4[%c0_2, %c0_3] : memref<1x128xf32, #tpu.memory_space<vmem>>, vector<1x128xf32>
    %c0_4 = arith.constant 0 : index
    %c0_5 = arith.constant 0 : index
    %5 = vector.load %arg5[%c0_4, %c0_5] : memref<1x128xf32, #tpu.memory_space<vmem>>, vector<1x128xf32>
    %c0_6 = arith.constant 0 : index
    %c0_7 = arith.constant 0 : index
    %6 = vector.load %arg7[%c0_6, %c0_7] : memref<8x128xf32, #tpu.memory_space<vmem>>, vector<8x128xf32>
    %c0_i32_8 = arith.constant 0 : i32
    %cst = arith.constant dense<0.000000e+00> : vector<8x128xf32>
    %7 = tpu.matmul %6, %3, %cst {dimension_numbers = #tpu.dot_dimension_numbers<[1], [0], [0], [1], [0, 0, 1, 1], [], []>} : vector<8x128xf32>, vector<128x128xf32>, vector<8x128xf32> -> vector<8x128xf32>
    %8 = arith.index_cast %c0_i32_8 : i32 to index
    %c0_9 = arith.constant 0 : index
    %c0_10 = arith.constant 0 : index
    %9 = vector.load %arg1[%8, %c0_9, %c0_10] : memref<4x8x128xf32, #tpu.memory_space<vmem>>, vector<1x8x128xf32>
    %10 = vector.shape_cast %9 : vector<1x8x128xf32> to vector<8x128xf32>
    %11 = arith.addf %7, %10 : vector<8x128xf32>
    %cst_11 = arith.constant 0.000000e+00 : f32
    %12 = vector.broadcast %cst_11 : f32 to vector<8x128xf32>
    %13 = arith.maximumf %11, %12 : vector<8x128xf32>
    %14 = vector.broadcast %5 : vector<1x128xf32> to vector<8x128xf32>
    %15 = arith.mulf %14, %6 : vector<8x128xf32>
    %16 = vector.broadcast %4 : vector<1x128xf32> to vector<8x128xf32>
    %17 = arith.mulf %16, %13 : vector<8x128xf32>
    %18 = arith.addf %15, %17 : vector<8x128xf32>
    %19 = arith.index_cast %c0_i32_8 : i32 to index
    %c0_12 = arith.constant 0 : index
    %c0_13 = arith.constant 0 : index
    %20 = vector.load %arg6[%19, %c0_12, %c0_13] : memref<4x8x128xf32, #tpu.memory_space<vmem>>, vector<1x8x128xf32>
    %21 = vector.shape_cast %20 : vector<1x8x128xf32> to vector<8x128xf32>
    %22 = vector.shape_cast %18 : vector<8x128xf32> to vector<1x8x128xf32>
    tpu.vector_store %arg6[%19, %c0_12, %c0_13], %22 {strides = array<i32>} : memref<4x8x128xf32, #tpu.memory_space<vmem>>, vector<1x8x128xf32>,
    %c1_i32 = arith.constant 1 : i32
    %cst_14 = arith.constant dense<0.000000e+00> : vector<8x128xf32>
    %23 = tpu.matmul %18, %3, %cst_14 {dimension_numbers = #tpu.dot_dimension_numbers<[1], [0], [0], [1], [0, 0, 1, 1], [], []>} : vector<8x128xf32>, vector<128x128xf32>, vector<8x128xf32> -> vector<8x128xf32>
    %24 = arith.index_cast %c1_i32 : i32 to index
    %c0_15 = arith.constant 0 : index
    %c0_16 = arith.constant 0 : index
    %25 = vector.load %arg1[%24, %c0_15, %c0_16] : memref<4x8x128xf32, #tpu.memory_space<vmem>>, vector<1x8x128xf32>
    %26 = vector.shape_cast %25 : vector<1x8x128xf32> to vector<8x128xf32>
    %27 = arith.addf %23, %26 : vector<8x128xf32>
    %cst_17 = arith.constant 0.000000e+00 : f32
    %28 = vector.broadcast %cst_17 : f32 to vector<8x128xf32>
    %29 = arith.maximumf %27, %28 : vector<8x128xf32>
    %30 = vector.broadcast %5 : vector<1x128xf32> to vector<8x128xf32>
    %31 = arith.mulf %30, %18 : vector<8x128xf32>
    %32 = vector.broadcast %4 : vector<1x128xf32> to vector<8x128xf32>
    %33 = arith.mulf %32, %29 : vector<8x128xf32>
    %34 = arith.addf %31, %33 : vector<8x128xf32>
    %35 = arith.index_cast %c1_i32 : i32 to index
    %c0_18 = arith.constant 0 : index
    %c0_19 = arith.constant 0 : index
    %36 = vector.load %arg6[%35, %c0_18, %c0_19] : memref<4x8x128xf32, #tpu.memory_space<vmem>>, vector<1x8x128xf32>
    %37 = vector.shape_cast %36 : vector<1x8x128xf32> to vector<8x128xf32>
    %38 = vector.shape_cast %34 : vector<8x128xf32> to vector<1x8x128xf32>
    tpu.vector_store %arg6[%35, %c0_18, %c0_19], %38 {strides = array<i32>} : memref<4x8x128xf32, #tpu.memory_space<vmem>>, vector<1x8x128xf32>,
    %c2_i32 = arith.constant 2 : i32
    %cst_20 = arith.constant dense<0.000000e+00> : vector<8x128xf32>
    %39 = tpu.matmul %34, %3, %cst_20 {dimension_numbers = #tpu.dot_dimension_numbers<[1], [0], [0], [1], [0, 0, 1, 1], [], []>} : vector<8x128xf32>, vector<128x128xf32>, vector<8x128xf32> -> vector<8x128xf32>
    %40 = arith.index_cast %c2_i32 : i32 to index
    %c0_21 = arith.constant 0 : index
    %c0_22 = arith.constant 0 : index
    %41 = vector.load %arg1[%40, %c0_21, %c0_22] : memref<4x8x128xf32, #tpu.memory_space<vmem>>, vector<1x8x128xf32>
    %42 = vector.shape_cast %41 : vector<1x8x128xf32> to vector<8x128xf32>
    %43 = arith.addf %39, %42 : vector<8x128xf32>
    %cst_23 = arith.constant 0.000000e+00 : f32
    %44 = vector.broadcast %cst_23 : f32 to vector<8x128xf32>
    %45 = arith.maximumf %43, %44 : vector<8x128xf32>
    %46 = vector.broadcast %5 : vector<1x128xf32> to vector<8x128xf32>
    %47 = arith.mulf %46, %34 : vector<8x128xf32>
    %48 = vector.broadcast %4 : vector<1x128xf32> to vector<8x128xf32>
    %49 = arith.mulf %48, %45 : vector<8x128xf32>
    %50 = arith.addf %47, %49 : vector<8x128xf32>
    %51 = arith.index_cast %c2_i32 : i32 to index
    %c0_24 = arith.constant 0 : index
    %c0_25 = arith.constant 0 : index
    %52 = vector.load %arg6[%51, %c0_24, %c0_25] : memref<4x8x128xf32, #tpu.memory_space<vmem>>, vector<1x8x128xf32>
    %53 = vector.shape_cast %52 : vector<1x8x128xf32> to vector<8x128xf32>
    %54 = vector.shape_cast %50 : vector<8x128xf32> to vector<1x8x128xf32>
    tpu.vector_store %arg6[%51, %c0_24, %c0_25], %54 {strides = array<i32>} : memref<4x8x128xf32, #tpu.memory_space<vmem>>, vector<1x8x128xf32>,
    %c3_i32 = arith.constant 3 : i32
    %cst_26 = arith.constant dense<0.000000e+00> : vector<8x128xf32>
    %55 = tpu.matmul %50, %3, %cst_26 {dimension_numbers = #tpu.dot_dimension_numbers<[1], [0], [0], [1], [0, 0, 1, 1], [], []>} : vector<8x128xf32>, vector<128x128xf32>, vector<8x128xf32> -> vector<8x128xf32>
    %56 = arith.index_cast %c3_i32 : i32 to index
    %c0_27 = arith.constant 0 : index
    %c0_28 = arith.constant 0 : index
    %57 = vector.load %arg1[%56, %c0_27, %c0_28] : memref<4x8x128xf32, #tpu.memory_space<vmem>>, vector<1x8x128xf32>
    %58 = vector.shape_cast %57 : vector<1x8x128xf32> to vector<8x128xf32>
    %59 = arith.addf %55, %58 : vector<8x128xf32>
    %cst_29 = arith.constant 0.000000e+00 : f32
    %60 = vector.broadcast %cst_29 : f32 to vector<8x128xf32>
    %61 = arith.maximumf %59, %60 : vector<8x128xf32>
    %62 = vector.broadcast %5 : vector<1x128xf32> to vector<8x128xf32>
    %63 = arith.mulf %62, %50 : vector<8x128xf32>
    %64 = vector.broadcast %4 : vector<1x128xf32> to vector<8x128xf32>
    %65 = arith.mulf %64, %61 : vector<8x128xf32>
    %66 = arith.addf %63, %65 : vector<8x128xf32>
    %67 = arith.index_cast %c3_i32 : i32 to index
    %c0_30 = arith.constant 0 : index
    %c0_31 = arith.constant 0 : index
    %68 = vector.load %arg6[%67, %c0_30, %c0_31] : memref<4x8x128xf32, #tpu.memory_space<vmem>>, vector<1x8x128xf32>
    %69 = vector.shape_cast %68 : vector<1x8x128xf32> to vector<8x128xf32>
    %70 = vector.shape_cast %66 : vector<8x128xf32> to vector<1x8x128xf32>
    tpu.vector_store %arg6[%67, %c0_30, %c0_31], %70 {strides = array<i32>} : memref<4x8x128xf32, #tpu.memory_space<vmem>>, vector<1x8x128xf32>,
    %c4_i32 = arith.constant 4 : i32
    %c0_32 = arith.constant 0 : index
    %c0_33 = arith.constant 0 : index
    %71 = vector.load %arg7[%c0_32, %c0_33] : memref<8x128xf32, #tpu.memory_space<vmem>>, vector<8x128xf32>
    tpu.vector_store %arg7[%c0_32, %c0_33], %66 {strides = array<i32>} : memref<8x128xf32, #tpu.memory_space<vmem>>, vector<8x128xf32>,
    return
  }
  func.func @transform_0(%arg0: i32) -> (i32, i32, i32) {
    %c0_i32 = arith.constant 0 : i32
    %c0_i32_0 = arith.constant 0 : i32
    %c0_i32_1 = arith.constant 0 : i32
    return %arg0, %c0_i32, %c0_i32_0 : i32, i32, i32
  }
  func.func @transform_1(%arg0: i32) -> (i32, i32) {
    %c0_i32 = arith.constant 0 : i32
    %c0_i32_0 = arith.constant 0 : i32
    %c0_i32_1 = arith.constant 0 : i32
    return %c0_i32, %c0_i32_0 : i32, i32
  }
  func.func @transform_2(%arg0: i32) -> (i32, i32) {
    %c0_i32 = arith.constant 0 : i32
    %c0_i32_0 = arith.constant 0 : i32
    %c0_i32_1 = arith.constant 0 : i32
    return %c0_i32, %c0_i32_0 : i32, i32
  }
  func.func @transform_3(%arg0: i32) -> (i32, i32) {
    %c0_i32 = arith.constant 0 : i32
    %c0_i32_0 = arith.constant 0 : i32
    %c0_i32_1 = arith.constant 0 : i32
    return %c0_i32, %c0_i32_0 : i32, i32
  }
  func.func @transform_4(%arg0: i32) -> (i32, i32) {
    %c0_i32 = arith.constant 0 : i32
    %c0_i32_0 = arith.constant 0 : i32
    %c0_i32_1 = arith.constant 0 : i32
    return %c0_i32, %c0_i32_0 : i32, i32
  }
  func.func @transform_5(%arg0: i32) -> (i32, i32, i32) {
    %c0_i32 = arith.constant 0 : i32
    %c0_i32_0 = arith.constant 0 : i32
    %c0_i32_1 = arith.constant 0 : i32
    return %arg0, %c0_i32, %c0_i32_0 : i32, i32, i32
  }
}

</mosaic_0001>

<bundles_post_ra>
// kernel: recurrent_net_forward.1
= control target key start
LH: loop header
LB: loop body
LE: loop exit
PB: predicated region body
PF: predicated region fallthrough
CT: control target
= control target key end

     0   :  { %s1008_s18 = smov 0   ;;  %s1164_s0 = inlined_call_operand.vmem [shape: f32[8,8,128], index: 0, kind: input, shape index: {}]   ;;  %s1165_s1 = inlined_call_operand.vmem [shape: f32[8,128], index: 1, kind: input, shape index: {}]   ;;  %s1166_s2 = inlined_call_operand.vmem [shape: f32[128,128], index: 2, kind: input, shape index: {}]   ;;  %s1167_s3 = inlined_call_operand.vmem [shape: f32[1,128], index: 3, kind: input, shape index: {}]   ;;  %s1168_s4 = inlined_call_operand.vmem [shape: f32[1,128], index: 4, kind: input, shape index: {}]   ;;  %s1169_s5 = inlined_call_operand.vmem [shape: f32[8,8,128], index: 5, kind: output, shape index: {}]  }
   0x1 LB: > { %s632_s19 = sadd.s32 4294967295, %s973_s18   ;;  %p636_p0 = scmp.ge.s32.totalorder %s973_s18, 1  ;;  %s973_s18 = sphi %s1008_s18, %s15_s18  }
   0x2   : > { %p188_p1 = scmp.lt.s32.totalorder %s973_s18, 3 }
   0x4   : > { %p189_p2 = pnand %p636_p0, %p188_p1 }
   0x5   : > { %s637_s20 = sshll.u32 (!%p189_p2), %s632_s19, 2  ;;  %p641_p4 = scmp.ne.s32.totalorder (!%p189_p2), %s632_s19, 0 }
   0x6   : > { %192 = sbr.rel (%p189_p2) target bundleno = 935 (0x3a7), region = 40  ;;  %p217_p3 = scmp.lt.s32.totalorder (!%p189_p2), %s637_s20, 7 }
   0xd   : > { %s1171_s20 = smov (!%p217_p3, %s637_s20), 7  ;;  %231 = sbr.rel (%p641_p4) target bundleno = 20 (0x14), region = 44 }
   0xe   : > { %s638_s21 = sshll.u32 %s1171_s20, 3  ;;  %v232_v0 = vld [vmem:[%s1165_s1] sm:$0xff] (!%p641_p4) }
   0xf   : > { %s1019_s24 = scalar_lea.vmem %s1164_s0, %s638_s21  ;;  %s1024_s27 = scalar_lea.vmem %s1169_s5, %s638_s21  ;;  %233 = vst [vmem:[#allocation2] sm:$0xff] (!%p641_p4), %v232_v0 }
  0x14 PF: > { %v234_v1 = vld [vmem:[%s1166_s2] sm:$0xff]  ;;  %v235_v2 = vld [vmem:[%s1166_s2 + $0x8] sm:$0xff]  ;;  %v236_v3 = vld [vmem:[%s1166_s2 + $0x10] sm:$0xff]  ;;  %v975_v4 = vmov 0.0|0.0   ;;  %vm976_vm0 = vmmov 0   ;;  %v977_v7 = vmov 0.0  }
  0x15   : > { %860 = vmatprep.subr.bf16.mxu0 %v975_v4  ;;  %v1039_v5 = vpack.c.bf16 %v235_v2, %v234_v1  ;;  %v237_v6 = vld [vmem:[%s1166_s2 + $0x18] sm:$0xff]  ;;  %752 = vmatprep.mubr.msk.f32.mxu0 %vm976_vm0, %v977_v7  ;;  %v238_v9 = vld [vmem:[%s1166_s2 + $0x20] sm:$0xff]  ;;  %v239_v10 = vld [vmem:[%s1166_s2 + $0x28] sm:$0xff] }
  0x16   : > { %884 = vmatprep.subr.bf16.mxu1 %v975_v4  ;;  %787 = vmatprep.mubr.msk.f32.mxu1 %vm976_vm0, %v977_v7  ;;  %v1050_v8 = vpack.c.bf16 %v237_v6, %v236_v3  ;;  %v1062_v11 = vpack.c.bf16 %v239_v10, %v238_v9  ;;  %v240_v12 = vld [vmem:[%s1166_s2 + $0x30] sm:$0xff]  ;;  %v241_v13 = vld [vmem:[%s1166_s2 + $0x38] sm:$0xff]  ;;  %v242_v15 = vld [vmem:[%s1166_s2 + $0x40] sm:$0xff] }
  0x17   : > { %862 = vmatpush3.bf16.msra.mxu0 %v1039_v5  ;;  %886 = vmatpush3.bf16.msra.mxu1 %v1039_v5  ;;  %v1074_v14 = vpack.c.bf16 %v241_v13, %v240_v12  ;;  %v243_v16 = vld [vmem:[%s1166_s2 + $0x48] sm:$0xff]  ;;  %v244_v18 = vld [vmem:[%s1166_s2 + $0x50] sm:$0xff]  ;;  %v245_v19 = vld [vmem:[%s1166_s2 + $0x58] sm:$0xff] }
  0x18   : > { %863 = vmatprep.subr.bf16.mxu0 %v975_v4  ;;  %887 = vmatprep.subr.bf16.mxu1 %v975_v4  ;;  %v1086_v17 = vpack.c.bf16 %v243_v16, %v242_v15  ;;  %v876_v20 = vpack.c.bf16 %v245_v19, %v244_v18  ;;  %v246_v21 = vld [vmem:[%s1166_s2 + $0x60] sm:$0xff]  ;;  %v247_v22 = vld [vmem:[%s1166_s2 + $0x68] sm:$0xff]  ;;  %v248_v24 = vld [vmem:[%s1166_s2 + $0x70] sm:$0xff] }
  0x19   : > { %v879_v23 = vpack.c.bf16 %v247_v22, %v246_v21  ;;  %v249_v25 = vld [vmem:[%s1166_s2 + $0x78] sm:$0xff]  ;;  %v252_v27 = vld [vmem:[#allocation2] sm:$0xff]  ;;  %v644_v38 = vld [vmem:[%s1019_s24 + $0x8] sm:$0xff] }
  0x1a   : > { %v882_v26 = vpack.c.bf16 %v249_v25, %v248_v24  ;;  %v253_v28 = vld [vmem:[%s1019_s24] sm:$0xff]  ;;  %v646_v46 = vld [vmem:[%s1019_s24 + $0x10] sm:$0xff]  ;;  %v648_v54 = vld [vmem:[%s1019_s24 + $0x18] sm:$0xff] }
  0x1b   : > { %865 = vmatpush3.bf16.msra.mxu0 %v1050_v8  ;;  %889 = vmatpush3.bf16.msra.mxu1 %v1050_v8  ;;  %v642_v29 = vld [vmem:[%s1168_s4] ss:$0 sm:$0xff] }
  0x1c   : > { %866 = vmatprep.subr.bf16.mxu0 %v975_v4  ;;  %890 = vmatprep.subr.bf16.mxu1 %v975_v4  ;;  %v643_v33 = vld [vmem:[%s1167_s3] ss:$0 sm:$0xff]  ;;  %v331_v34 = vmul.f32 %v642_v29, %v252_v27 }
  0x1f   : > { %868 = vmatpush3.bf16.msra.mxu0 %v1062_v11  ;;  %892 = vmatpush3.bf16.msra.mxu1 %v1062_v11 }
  0x20   : > { %869 = vmatprep.subr.bf16.mxu0 %v975_v4  ;;  %893 = vmatprep.subr.bf16.mxu1 %v975_v4 }
  0x23   : > { %871 = vmatpush3.bf16.msra.mxu0 %v1074_v14  ;;  %895 = vmatpush3.bf16.msra.mxu1 %v1074_v14 }
  0x24   : > { %872 = vmatprep.subr.bf16.mxu0 %v975_v4  ;;  %896 = vmatprep.subr.bf16.mxu1 %v975_v4 }
  0x27   : > { %874 = vmatpush3.bf16.msra.mxu0 %v1086_v17  ;;  %898 = vmatpush3.bf16.msra.mxu1 %v1086_v17 }
  0x28   : > { %875 = vmatprep.subr.bf16.mxu0 %v975_v4  ;;  %899 = vmatprep.subr.bf16.mxu1 %v975_v4 }
  0x2b   : > { %877 = vmatpush3.bf16.msra.mxu0 %v876_v20  ;;  %901 = vmatpush3.bf16.msra.mxu1 %v876_v20 }
  0x2c   : > { %878 = vmatprep.subr.bf16.mxu0 %v975_v4  ;;  %902 = vmatprep.subr.bf16.mxu1 %v975_v4 }
  0x2f   : > { %880 = vmatpush3.bf16.msra.mxu0 %v879_v23  ;;  %904 = vmatpush3.bf16.msra.mxu1 %v879_v23 }
  0x30   : > { %881 = vmatprep.subr.bf16.mxu0 %v975_v4  ;;  %905 = vmatprep.subr.bf16.mxu1 %v975_v4 }
  0x33   : > { %883 = vmatpush3.bf16.msra.mxu0 %v882_v26  ;;  %907 = vmatpush3.bf16.msra.mxu1 %v882_v26 }
  0x34   : > { %908 = vmatprep.subr.bf16.mxu0 %v975_v4  ;;  %932 = vmatprep.subr.bf16.mxu1 %v975_v4 }
  0x36   : > { %753 = vmatmul.mubr.f32.vlgmr.msra.gmra.mrb[0].mxu0 %v252_v27 }
  0x37   : > { %910 = vmatpush3.bf16.msra.mxu0 %v1039_v5  ;;  %822 = vmatprep.mubr.msk.f32.mxu0 %vm976_vm0, %v977_v7 }
  0x38   : > { %911 = vmatprep.subr.bf16.mxu0 %v975_v4 }
  0x3b   : > { %913 = vmatpush3.bf16.msra.mxu0 %v1050_v8 }
  0x3c   : > { %914 = vmatprep.subr.bf16.mxu0 %v975_v4 }
  0x3f   : > { %916 = vmatpush3.bf16.msra.mxu0 %v1062_v11 }
  0x40   : > { %917 = vmatprep.subr.bf16.mxu0 %v975_v4 }
  0x43   : > { %919 = vmatpush3.bf16.msra.mxu0 %v1074_v14 }
  0x44   : > { %920 = vmatprep.subr.bf16.mxu0 %v975_v4 }
  0x47   : > { %922 = vmatpush3.bf16.msra.mxu0 %v1086_v17 }
  0x48   : > { %923 = vmatprep.subr.bf16.mxu0 %v975_v4 }
  0x4b   : > { %925 = vmatpush3.bf16.msra.mxu0 %v876_v20 }
  0x4c   : > { %926 = vmatprep.subr.bf16.mxu0 %v975_v4 }
  0x4f   : > { %928 = vmatpush3.bf16.msra.mxu0 %v879_v23 }
  0x50   : > { %929 = vmatprep.subr.bf16.mxu0 %v975_v4 }
  0x53   : > { %931 = vmatpush3.bf16.msra.mxu0 %v882_v26 }
 0x109   : > { %v320_v30 = vpop.f32.mrb[0].mxu0 }
 0x10a   : > { %v321_v31 = vadd.f32 %v320_v30, %v253_v28  ;;  %v754_v32 = vpop.f32.mrb[1].mxu0 }
 0x10c   : > { %v324_v35 = vmax.f32 %v321_v31, 0.0 }
 0x10e   : > { %v338_v36 = vmul.f32 %v643_v33, %v324_v35 }
 0x110   : > { %v339_v37 = vadd.f32 %v338_v36, %v331_v34 }
 0x112   : > { %340 = vst [vmem:[%s1024_s27] sm:$0xff] %v339_v37  ;;  %788 = vmatmul.mubr.f32.vlgmr.msra.gmra.mrb[0].mxu1 %v339_v37  ;;  %v414_v43 = vmul.f32 %v642_v29, %v339_v37 }
 0x113   : > { %934 = vmatpush3.bf16.msra.mxu1 %v1039_v5  ;;  %857 = vmatprep.mubr.msk.f32.mxu1 %vm976_vm0, %v977_v7 }
 0x114   : > { %935 = vmatprep.subr.bf16.mxu1 %v975_v4 }
 0x117   : > { %937 = vmatpush3.bf16.msra.mxu1 %v1050_v8 }
 0x118   : > { %938 = vmatprep.subr.bf16.mxu1 %v975_v4 }
 0x11b   : > { %940 = vmatpush3.bf16.msra.mxu1 %v1062_v11 }
 0x11c   : > { %941 = vmatprep.subr.bf16.mxu1 %v975_v4 }
 0x11f   : > { %943 = vmatpush3.bf16.msra.mxu1 %v1074_v14 }
 0x120   : > { %944 = vmatprep.subr.bf16.mxu1 %v975_v4 }
 0x123   : > { %946 = vmatpush3.bf16.msra.mxu1 %v1086_v17 }
 0x124   : > { %947 = vmatprep.subr.bf16.mxu1 %v975_v4 }
 0x127   : > { %949 = vmatpush3.bf16.msra.mxu1 %v876_v20 }
 0x128   : > { %950 = vmatprep.subr.bf16.mxu1 %v975_v4 }
 0x12b   : > { %952 = vmatpush3.bf16.msra.mxu1 %v879_v23 }
 0x12c   : > { %953 = vmatprep.subr.bf16.mxu1 %v975_v4 }
 0x12f   : > { %955 = vmatpush3.bf16.msra.mxu1 %v882_v26 }
 0x1e5   : > { %v409_v39 = vpop.f32.mrb[0].mxu1 }
 0x1e6   : > { %v410_v40 = vadd.f32 %v644_v38, %v409_v39  ;;  %v789_v41 = vpop.f32.mrb[1].mxu1 }
 0x1e8   : > { %v413_v42 = vmax.f32 %v410_v40, 0.0 }
 0x1ea   : > { %v415_v44 = vmul.f32 %v643_v33, %v413_v42 }
 0x1ec   : > { %v416_v45 = vadd.f32 %v415_v44, %v414_v43 }
 0x1ee   : > { %645 = vst [vmem:[%s1024_s27 + $0x8] sm:$0xff] %v416_v45  ;;  %823 = vmatmul.mubr.f32.vlgmr.msra.gmra.mrb[2].mxu0 %v416_v45  ;;  %v492_v51 = vmul.f32 %v642_v29, %v416_v45 }
 0x2c1   : > { %v487_v47 = vpop.f32.mrb[2].mxu0 }
 0x2c2   : > { %v488_v48 = vadd.f32 %v646_v46, %v487_v47  ;;  %v824_v49 = vpop.f32.mrb[3].mxu0 }
 0x2c4   : > { %v491_v50 = vmax.f32 %v488_v48, 0.0 }
 0x2c6   : > { %v493_v52 = vmul.f32 %v643_v33, %v491_v50 }
 0x2c8   : > { %v494_v53 = vadd.f32 %v493_v52, %v492_v51 }
 0x2ca   : > { %647 = vst [vmem:[%s1024_s27 + $0x10] sm:$0xff] %v494_v53  ;;  %858 = vmatmul.mubr.f32.vlgmr.msra.gmra.mrb[2].mxu1 %v494_v53  ;;  %v570_v59 = vmul.f32 %v642_v29, %v494_v53 }
 0x39d   : > { %v565_v55 = vpop.f32.mrb[2].mxu1 }
 0x39e   : > { %v566_v56 = vadd.f32 %v648_v54, %v565_v55  ;;  %v859_v57 = vpop.f32.mrb[3].mxu1 }
 0x3a0   : > { %v569_v58 = vmax.f32 %v566_v56, 0.0 }
 0x3a2   : > { %v571_v60 = vmul.f32 %v643_v33, %v569_v58 }
 0x3a4   : > { %v572_v61 = vadd.f32 %v571_v60, %v570_v59 }
 0x3a6   : > { %649 = vst [vmem:[%s1024_s27 + $0x18] sm:$0xff] %v572_v61  ;;  %575 = vst [vmem:[#allocation2] sm:$0xff] %v572_v61 }
 0x3a7 PF: > { %s15_s18 = sadd.s32 1, %s973_s18  }
 0x3a8   : > { %p12_p5 = scmp.ge.s32.totalorder %s15_s18, 4  }
 0x3aa   :  { %14 = sbr.rel (!%p12_p5) target bundleno = 1 (0x1), region = 80 }

</bundles_post_ra>
